<compile_context>
chip_gen: v5e
topology: v5e:2x2
jax: 0.10.0
libtpu: 0.0.40
codegen_flags: <defaults>
</compile_context>

<pallas_src>
import functools
import math

import jax
import jax.numpy as jnp
from jax.experimental import pallas as pl
from jax.experimental.pallas import tpu as pltpu

_LANE = 128
_SUBLANE = 8


def _round_up(a, m):
    return ((a + m - 1) // m) * m


def _choose_block_c(num_classes, embed_size, itemsize=4,
                    weight_buffer_bytes=4 * 1024 * 1024,
                    max_block_c=2048):
    """Largest multiple-of-128 class tile whose weight slab fits a per-buffer
    budget small enough for every TPU generation once double-buffered."""
    per_row = max(1, embed_size * itemsize)
    tc = (weight_buffer_bytes // per_row) // _LANE * _LANE
    tc = max(_LANE, min(int(tc), max_block_c))
    return int(min(tc, _round_up(num_classes, _LANE)))


def _linear_norm_kernel(y_ref, x_ref, w_ref, o_ref, *, margin, scale):
    """One class-tile step.

    y_ref: (B, 1)  int32   labels (grid-invariant)
    x_ref: (B, E)  f32/bf16 embeddings (grid-invariant)
    w_ref: (TC, E) f32/bf16 weight tile for this grid step (streamed)
    o_ref: (B, TC) f32     output logit tile
    """
    x = x_ref[...]                           # (B, E)
    w = w_ref[...]                           # (TC, E)
    y = y_ref[...]                           # (B, 1) int32

    # --- per-class inverse L2 norm, laid out lane-major ----------------------
    # sum_e w[c,e]^2 via a tiny ones-row MXU pass: result rows are identical and
    # already have the class dim on lanes, avoiding a (TC,1)->(1,TC) relayout.
    w_f32 = w.astype(jnp.float32)
    ones_rows = jnp.ones((_SUBLANE, w_f32.shape[1]), dtype=jnp.float32)
    nsq = jax.lax.dot_general(
        ones_rows, w_f32 * w_f32,
        dimension_numbers=(((1,), (1,)), ((), ())),
        preferred_element_type=jnp.float32)               # (8, TC)
    # eps matches F.normalize: 1/max(||w||, 1e-12) == rsqrt(max(sum_sq, 1e-24))
    inv_norm = jax.lax.rsqrt(jnp.maximum(nsq[0:1, :], 1e-24))   # (1, TC)

    # --- raw logits on the MXU, normalization folded in post-matmul ----------
    raw = jax.lax.dot_general(
        x, w,
        dimension_numbers=(((1,), (1,)), ((), ())),
        preferred_element_type=jnp.float32)               # (B, TC)
    logit = raw * inv_norm                                # x @ normalize(w).T

    # --- margin transform on the target logit (scatter via mask/where) -------
    B, TC = logit.shape
    col0 = pl.program_id(0) * TC                          # global column offset
    col_ids = col0 + jax.lax.broadcasted_iota(jnp.int32, (B, TC), 1)
    target_mask = col_ids == y                            # (B,1) broadcasts

    sin_m = math.sin(margin)
    cos_m = math.cos(margin)
    modified = (sin_m * logit + cos_m) * logit - sin_m
    o_ref[...] = (jnp.where(target_mask, modified, logit) * scale).astype(o_ref.dtype)


def linear_norm_forward(x, weight, y, *, margin=0.7, scale=40.0,
                        block_c=None, compute_dtype=None):
    """Pallas wrapper.

    x: (B, E) f32, weight: (C, E) f32, y: (B,) int labels.
    block_c: class-tile width (multiple of 128); auto-chosen if None.
    compute_dtype: e.g. jnp.bfloat16 on v6e/v7x to halve weight HBM traffic
                   (validate tolerance first); None keeps f32.
    """
    B, E = x.shape
    C, E_w = weight.shape
    assert E == E_w, "x and weight embed sizes must match"
    orig_B, orig_C = B, C

    # Pad batch to a sublane multiple so blocks are legal / stores unmasked.
    B_pad = _round_up(B, _SUBLANE)
    y_i32 = jnp.asarray(y, jnp.int32)
    if B_pad != B:
        x = jnp.pad(x, ((0, B_pad - B), (0, 0)))
        y_i32 = jnp.pad(y_i32, (0, B_pad - B), constant_values=-1)  # never matches
    y2 = y_i32.reshape(B_pad, 1)

    # Choose lane-dense class tile and pad C to a whole number of tiles.
    itemsize = jnp.dtype(compute_dtype).itemsize if compute_dtype is not None else 4
    if block_c is None:
        block_c = _choose_block_c(C, E, itemsize=itemsize)
    block_c = int(block_c)
    assert block_c % _LANE == 0, "block_c must be a multiple of 128"
    C_pad = _round_up(C, block_c)
    w = weight if C_pad == C else jnp.pad(weight, ((0, C_pad - C), (0, 0)))

    if compute_dtype is not None:
        x = x.astype(compute_dtype)
        w = w.astype(compute_dtype)

    x_bytes = jnp.dtype(x.dtype).itemsize
    w_bytes = jnp.dtype(w.dtype).itemsize
    vmem_needed = (2 * block_c * E * w_bytes      # double-buffered weight stream
                   + 2 * B_pad * E * x_bytes      # x block (grid-invariant)
                   + 2 * B_pad * block_c * 4      # double-buffered output tile
                   + 2 * B_pad * 4)               # labels
    # Headroom for Mosaic scratch; cap below v7x's 64 MiB physical VMEM.
    vmem_limit = int(min(max(2 * vmem_needed, 32 * 1024 * 1024),
                         56 * 1024 * 1024))

    grid = (C_pad // block_c,)
    kernel = functools.partial(_linear_norm_kernel,
                               margin=float(margin), scale=float(scale))

    out = pl.pallas_call(
        kernel,
        out_shape=jax.ShapeDtypeStruct((B_pad, C_pad), jnp.float32),
        grid=grid,
        in_specs=[
            pl.BlockSpec((B_pad, 1), lambda c: (0, 0)),     # labels (replicated)
            pl.BlockSpec((B_pad, E), lambda c: (0, 0)),     # x (replicated)
            pl.BlockSpec((block_c, E), lambda c: (c, 0)),   # weight tile (streamed)
        ],
        out_specs=pl.BlockSpec((B_pad, block_c), lambda c: (0, c)),
        compiler_params=pltpu.CompilerParams(
            dimension_semantics=("parallel",),   # v7x megacore splits class tiles
            vmem_limit_bytes=vmem_limit,
        ),
    )(y2, x, w)

    return out[:orig_B, :orig_C]


def _reference(x, weight, y, *, margin=0.7, scale=40.0):
    """Pure-JAX reference mirroring the PyTorch forward."""
    w_n = weight / jnp.maximum(
        jnp.linalg.norm(weight, axis=1, keepdims=True), 1e-12)
    logit = x @ w_n.T
    out = logit[jnp.arange(logit.shape[0]), y]
    new_vals = (math.sin(margin) * out + math.cos(margin)) * out - math.sin(margin)
    logit = logit.at[jnp.arange(logit.shape[0]), y].set(new_vals)
    return logit * scale


if __name__ == "__main__":
    # Small shapes consistent with the module; deliberately "awkward"
    # (B not a multiple of 8, C not a multiple of 128) to exercise the
    # padding + multi-step class-tiled grid (block_c=256 -> 4 grid steps).
    B, E, C = 6, 64, 1000
    margin, scale = 0.7, 40.0

    key = jax.random.PRNGKey(0)
    kx, kw, ky = jax.random.split(key, 3)

    # Deterministic kaiming_normal_ equivalent: std = sqrt(2 / fan_in), fan_in=E.
    weight = jax.random.normal(kw, (C, E), dtype=jnp.float32) * math.sqrt(2.0 / E)
    x = jax.random.normal(kx, (B, E), dtype=jnp.float32)
    y = jax.random.randint(ky, (B,), 0, C, dtype=jnp.int32)

    logits = linear_norm_forward(x, weight, y, margin=margin, scale=scale,
                                 block_c=256)
    logits = jax.block_until_ready(logits)

    ref = _reference(x, weight, y, margin=margin, scale=scale)
    assert logits.shape == (B, C)
    max_err = jnp.max(jnp.abs(logits - ref))
    assert jnp.allclose(logits, ref, atol=1e-3, rtol=1e-3), (
        f"max abs err: {max_err}"
    )

    print("KERNEL_OK")
</pallas_src>

<mosaic_0001>
module attributes {stable_mosaic.version = 11 : i64} {
  func.func @_linear_norm_kernel(%arg0: i32, %arg1: memref<8x1xi32, #tpu.memory_space<vmem>>, %arg2: memref<8x64xf32, #tpu.memory_space<vmem>>, %arg3: memref<256x64xf32, #tpu.memory_space<vmem>>, %arg4: memref<8x256xf32, #tpu.memory_space<vmem>>) attributes {dimension_semantics = [#tpu.dimension_semantics<parallel>], iteration_bounds = array<i64: 4>, scalar_prefetch = 0 : i64, scratch_operands = 0 : i64, tpu.core_type = #tpu.core_type<tc>, window_params = [{pipeline_mode = #tpu.pipeline_mode<synchronous>, transform_indices = @transform_0, window_bounds = array<i64: 8, 1>}, {pipeline_mode = #tpu.pipeline_mode<synchronous>, transform_indices = @transform_1, window_bounds = array<i64: 8, 64>}, {transform_indices = @transform_2, window_bounds = array<i64: 256, 64>}, {transform_indices = @transform_3, window_bounds = array<i64: 8, 256>}]} {
    %c0 = arith.constant 0 : index
    %c0_0 = arith.constant 0 : index
    %0 = vector.load %arg2[%c0, %c0_0] : memref<8x64xf32, #tpu.memory_space<vmem>>, vector<8x64xf32>
    %c0_1 = arith.constant 0 : index
    %c0_2 = arith.constant 0 : index
    %1 = vector.load %arg3[%c0_1, %c0_2] : memref<256x64xf32, #tpu.memory_space<vmem>>, vector<256x64xf32>
    %c0_3 = arith.constant 0 : index
    %c0_4 = arith.constant 0 : index
    %2 = vector.load %arg1[%c0_3, %c0_4] : memref<8x1xi32, #tpu.memory_space<vmem>>, vector<8x1xi32>
    %cst = arith.constant 1.000000e+00 : f32
    %3 = vector.broadcast %cst : f32 to vector<8x64xf32>
    %4 = arith.mulf %1, %1 : vector<256x64xf32>
    %cst_5 = arith.constant dense<0.000000e+00> : vector<8x256xf32>
    %5 = tpu.matmul %3, %4, %cst_5 {dimension_numbers = #tpu.dot_dimension_numbers<[1], [1], [0], [0], [0, 0, 1, 0], [], []>} : vector<8x64xf32>, vector<256x64xf32>, vector<8x256xf32> -> vector<8x256xf32>
    %6 = vector.extract_strided_slice %5 {offsets = [0, 0], sizes = [1, 256], strides = [1, 1]} : vector<8x256xf32> to vector<1x256xf32>
    %cst_6 = arith.constant 1.000000e-24 : f32
    %7 = vector.broadcast %cst_6 : f32 to vector<1x256xf32>
    %8 = arith.maximumf %6, %7 : vector<1x256xf32>
    %9 = math.rsqrt %8 : vector<1x256xf32>
    %cst_7 = arith.constant dense<0.000000e+00> : vector<8x256xf32>
    %10 = tpu.matmul %0, %1, %cst_7 {dimension_numbers = #tpu.dot_dimension_numbers<[1], [1], [0], [0], [0, 0, 1, 0], [], []>} : vector<8x64xf32>, vector<256x64xf32>, vector<8x256xf32> -> vector<8x256xf32>
    %11 = vector.broadcast %9 : vector<1x256xf32> to vector<8x256xf32>
    %12 = arith.mulf %10, %11 : vector<8x256xf32>
    %c256_i32 = arith.constant 256 : i32
    %13 = arith.muli %arg0, %c256_i32 : i32
    %14 = tpu.iota {dimensions = array<i32: 1>} : vector<8x256xi32>
    %15 = vector.broadcast %13 : i32 to vector<8x256xi32>
    %16 = arith.addi %15, %14 : vector<8x256xi32>
    %17 = vector.broadcast %2 : vector<8x1xi32> to vector<8x256xi32>
    %18 = arith.cmpi eq, %16, %17 : vector<8x256xi32>
    %cst_8 = arith.constant 0.644217669 : f32
    %19 = vector.broadcast %cst_8 : f32 to vector<8x256xf32>
    %20 = arith.mulf %19, %12 : vector<8x256xf32>
    %cst_9 = arith.constant 0.764842212 : f32
    %21 = vector.broadcast %cst_9 : f32 to vector<8x256xf32>
    %22 = arith.addf %20, %21 : vector<8x256xf32>
    %23 = arith.mulf %22, %12 : vector<8x256xf32>
    %cst_10 = arith.constant 0.644217669 : f32
    %24 = vector.broadcast %cst_10 : f32 to vector<8x256xf32>
    %25 = arith.subf %23, %24 : vector<8x256xf32>
    %26 = arith.select %18, %25, %12 : vector<8x256xi1>, vector<8x256xf32>
    %cst_11 = arith.constant 4.000000e+01 : f32
    %27 = vector.broadcast %cst_11 : f32 to vector<8x256xf32>
    %28 = arith.mulf %26, %27 : vector<8x256xf32>
    %c0_12 = arith.constant 0 : index
    %c0_13 = arith.constant 0 : index
    %29 = vector.load %arg4[%c0_12, %c0_13] : memref<8x256xf32, #tpu.memory_space<vmem>>, vector<8x256xf32>
    tpu.vector_store %arg4[%c0_12, %c0_13], %28 {strides = array<i32>} : memref<8x256xf32, #tpu.memory_space<vmem>>, vector<8x256xf32>,
    return
  }
  func.func @transform_0(%arg0: i32) -> (i32, i32) {
    %c0_i32 = arith.constant 0 : i32
    %c0_i32_0 = arith.constant 0 : i32
    %c0_i32_1 = arith.constant 0 : i32
    return %c0_i32, %c0_i32_0 : i32, i32
  }
  func.func @transform_1(%arg0: i32) -> (i32, i32) {
    %c0_i32 = arith.constant 0 : i32
    %c0_i32_0 = arith.constant 0 : i32
    %c0_i32_1 = arith.constant 0 : i32
    return %c0_i32, %c0_i32_0 : i32, i32
  }
  func.func @transform_2(%arg0: i32) -> (i32, i32) {
    %c0_i32 = arith.constant 0 : i32
    %c0_i32_0 = arith.constant 0 : i32
    return %arg0, %c0_i32 : i32, i32
  }
  func.func @transform_3(%arg0: i32) -> (i32, i32) {
    %c0_i32 = arith.constant 0 : i32
    %c0_i32_0 = arith.constant 0 : i32
    return %c0_i32, %arg0 : i32, i32
  }
}

</mosaic_0001>

<bundles_post_ra>
// kernel: tpu_custom_call.1
= control target key start
LH: loop header
LB: loop body
LE: loop exit
PB: predicated region body
PF: predicated region fallthrough
CT: control target
= control target key end

     0   :  { %8 = vsyncpa [#allocation3], 0  ;;  %s1054_s0 = inlined_call_operand.vmem [shape: s32[8,1], index: 0, kind: input, shape index: {}]   ;;  %s1055_s1 = inlined_call_operand.vmem [shape: f32[8,64], index: 1, kind: input, shape index: {}]   ;;  %s1056_s2 = inlined_call_operand.vmem [shape: f32[1024,64], index: 2, kind: input, shape index: {}]   ;;  %s1057_s3 = inlined_call_operand.hbm [shape: f32[8,1024], index: 3, kind: output, shape index: {}]  }
   0x1   :  { %10 = vsyncpa [#allocation3 + $0x1], 0  ;;  %s861_s12 = smov 0   ;;  %s863_s13 = smov 0  }
   0x2   :  { %s865_s14 = smov 0   ;;  %s867_s15 = smov 0  }
   0x3 LB: > { %s882_s16 = sadd.s32 4294967295, %s837_s15   ;;  %s645_s17 = sadd.s32 4294967294, %s837_s15   ;;  %s837_s15 = sphi %s867_s15, %s1063_s15   ;;  %s833_s14 = sphi %s865_s14, %s1062_s14   ;;  %s829_s13 = sphi %s863_s13, %s1061_s13   ;;  %s825_s12 = sphi %s861_s12, %s1060_s12  }
   0x4   : > { %s886_s18 = sadd.s32 1, %s837_s15   ;;  %s91_s19 = sadd.s32 1, %s833_s14 }
   0x5   : > { %s88_s20 = ssub.s32 %s837_s15, %s886_s18  ;;  %p101_p0 = scmp.ne.s32.totalorder %s833_s14, %s829_s13 }
   0x6   : > { %p89_p1 = scmp.eq.s32.totalorder %s88_s20, 0  ;;  %p102_p2 = scmp.eq.s32.totalorder %s882_s16, 3 }
   0x7   : > { %p107_p3 = scmp.ne.s32.totalorder %s829_s13, %s825_s12  ;;  %p108_p4 = scmp.eq.s32.totalorder %s645_s17, 3 }
   0x8   : > { %s897_s21 = scalar_select %p89_p1, %s833_s14, %s91_s19  }
   0x9   : > { %p899_p5 = por %p102_p2, %p101_p0  ;;  %p903_p6 = por %p108_p4, %p107_p3 }
   0xa   : > { %p648_p7 = scmp.ge.s32.totalorder %s837_s15, 1  ;;  %p141_p8 = scmp.lt.s32.totalorder %s837_s15, 5 }
   0xc   : > { %p142_p9 = pnand %p648_p7, %p141_p8 }
   0xd   : > { %s650_s24 = sshll.u32 (!%p142_p9), %s882_s16, 5  ;;  %s720_s6 = sshll.u32 (!%p142_p9), %s882_s16, 8 }
   0xe   : > { %145 = sbr.rel (%p142_p9) target bundleno = 253 (0xfd), region = 32  ;;  %p166_p10 = scmp.lt.s32.totalorder (!%p142_p9), %s650_s24, 127 }
   0xf   : > { %s162_s7 = sand.u32 (!%p142_p9), 1, %s829_s13   ;;  %s728_s9 = sshll.u32 (!%p142_p9), %s882_s16, 4 }
  0x10   : > { %s649_s8 = sshll.u32 (!%p142_p9), %s162_s7, 4  ;;  %s581_s17 = scalar_lea.hbm (!%p142_p9), %s1057_s3, %s728_s9 }
  0x11   : > { %s164_s19 = scalar_lea.vmem (!%p142_p9), [#allocation2], %s649_s8  ;;  %s570_s16 = scalar_lea.sflag (!%p142_p9), [#allocation3], %s162_s7 }
  0x12   : > { %s583_s20 = sshll.u32 (!%p142_p9), %s164_s19, 4  ;;  %s795_s29 = scalar_lea.hbm (!%p142_p9), %s1057_s3, 64  ;;  %s584_s20 = int_to_ptr.vmem [resolvable:$true] %s583_s20 }
  0x13   : > { %s1065_s24 = smov (!%p166_p10, %s650_s24), 127  ;;  %vm238_vm0 = vcmask 523264   ;;  %v205_v40 = vld [vmem:[%s1054_s0] sm:$0xff]  ;;  %v839_v43 = vmov 0  }
  0x14   : > { %s651_s25 = sshll.u32 %s1065_s24, 3  ;;  %770 = vset.pattern.permute.xlu0 %v839_v43  ;;  %s585_s24 = sshll.u32 %s581_s17, 4  ;;  %s586_s24 = int_to_ptr.hbm [resolvable:$true] %s585_s24 }
  0x15   : > { %s913_s28 = scalar_lea.vmem %s1056_s2, %s651_s25  ;;  %551 = vperm.xlu0 %770, %v205_v40   ;;  %s789_s25 = sshra.s32 %s586_s24, 4  ;;  %s790_s25 = int_to_ptr.hbm [resolvable:$true] %s789_s25 }
  0x16   : > { %v188_v0 = vld [vmem:[%s913_s28 + $0x78] sm:$0xff]  ;;  %v187_v2 = vld [vmem:[%s913_s28 + $0x70] sm:$0xff]  ;;  %v186_v8 = vld [vmem:[%s913_s28 + $0x68] sm:$0xff]  ;;  %s791_s26 = scalar_lea.hbm %s790_s25, 16  ;;  %p796_p0 = scmp.lt.s32.totalorder %s790_s25, %s1057_s3 }
  0x17   : > { %v204_v1 = vld [vmem:[%s913_s28 + $0xf8] sm:$0xff]  ;;  %v221_v3 = vmul.f32 %v188_v0, %v188_v0  ;;  %v203_v5 = vld [vmem:[%s913_s28 + $0xf0] sm:$0xff]  ;;  %686 = vmatpush.xpose.msk.msra.mxu2 %vm238_vm0, %v188_v0  ;;  %v220_v6 = vmul.f32 %v187_v2, %v187_v2  ;;  %v202_v9 = vld [vmem:[%s913_s28 + $0xe8] sm:$0xff]  ;;  %v219_v10 = vmul.f32 %v186_v8, %v186_v8  ;;  %p792_p11 = scmp.ne.s32.totalorder %s790_s25, %s791_s26  ;;  %p797_p1 = scmp.lt.s32.totalorder %s795_s29, %s791_s26 }
  0x18   : > { %v237_v4 = vmul.f32 %v204_v1, %v204_v1  ;;  %703 = vmatpush.xpose.msk.msra.mxu3 %vm238_vm0, %v204_v1  ;;  %v236_v7 = vmul.f32 %v203_v5, %v203_v5  ;;  %v235_v11 = vmul.f32 %v202_v9, %v202_v9  ;;  %v185_v12 = vld [vmem:[%s913_s28 + $0x60] sm:$0xff]  ;;  %v184_v16 = vld [vmem:[%s913_s28 + $0x58] sm:$0xff]  ;;  %v183_v20 = vld [vmem:[%s913_s28 + $0x50] sm:$0xff] }
  0x19   : > { %652 = vmatpush.xpose.msk.msra.mxu0 %vm238_vm0, %v221_v3  ;;  %v201_v13 = vld [vmem:[%s913_s28 + $0xe0] sm:$0xff]  ;;  %v218_v14 = vmul.f32 %v185_v12, %v185_v12  ;;  %v200_v17 = vld [vmem:[%s913_s28 + $0xd8] sm:$0xff]  ;;  %v217_v18 = vmul.f32 %v184_v16, %v184_v16  ;;  %v199_v21 = vld [vmem:[%s913_s28 + $0xd0] sm:$0xff]  ;;  %v216_v22 = vmul.f32 %v183_v20, %v183_v20  ;;  %v840_v3 = vmov 1.0   ;;  %p793_p12 = pnand %p792_p11, %p899_p5  ;;  %p798_p2 = por %p797_p1, %p796_p0 }
  0x1a   : > { %669 = vmatpush.xpose.msk.msra.mxu1 %vm238_vm0, %v237_v4  ;;  %v234_v15 = vmul.f32 %v201_v13, %v201_v13  ;;  %v233_v19 = vmul.f32 %v200_v17, %v200_v17  ;;  %v232_v23 = vmul.f32 %v199_v21, %v199_v21  ;;  %v182_v24 = vld [vmem:[%s913_s28 + $0x48] sm:$0xff]  ;;  %v181_v28 = vld [vmem:[%s913_s28 + $0x40] sm:$0xff]  ;;  %v180_v32 = vld [vmem:[%s913_s28 + $0x38] sm:$0xff] }
  0x1b   : > { %687 = vmatpush.xpose.msk.msra.mxu2 %vm238_vm0, %v187_v2  ;;  %v198_v25 = vld [vmem:[%s913_s28 + $0xc8] sm:$0xff]  ;;  %v215_v26 = vmul.f32 %v182_v24, %v182_v24  ;;  %v197_v29 = vld [vmem:[%s913_s28 + $0xc0] sm:$0xff]  ;;  %v214_v30 = vmul.f32 %v181_v28, %v181_v28  ;;  %v196_v33 = vld [vmem:[%s913_s28 + $0xb8] sm:$0xff]  ;;  %v213_v34 = vmul.f32 %v180_v32, %v180_v32  ;;  %p794_p13 = pneg %p793_p12 }
  0x1c   : > { %704 = vmatpush.xpose.msk.msra.mxu3 %vm238_vm0, %v203_v5  ;;  %v231_v27 = vmul.f32 %v198_v25, %v198_v25  ;;  %v230_v31 = vmul.f32 %v197_v29, %v197_v29  ;;  %v229_v35 = vmul.f32 %v196_v33, %v196_v33  ;;  %v179_v36 = vld [vmem:[%s913_s28 + $0x30] sm:$0xff]  ;;  %v178_v41 = vld [vmem:[%s913_s28 + $0x28] sm:$0xff]  ;;  %v177_v46 = vld [vmem:[%s913_s28 + $0x20] sm:$0xff] }
  0x1d   : > { %653 = vmatpush.xpose.msk.msra.mxu0 %vm238_vm0, %v220_v6  ;;  %v195_v37 = vld [vmem:[%s913_s28 + $0xb0] sm:$0xff]  ;;  %v212_v38 = vmul.f32 %v179_v36, %v179_v36  ;;  %v194_v42 = vld [vmem:[%s913_s28 + $0xa8] sm:$0xff]  ;;  %v211_v44 = vmul.f32 %v178_v41, %v178_v41  ;;  %v193_v47 = vld [vmem:[%s913_s28 + $0xa0] sm:$0xff]  ;;  %v210_v48 = vmul.f32 %v177_v46, %v177_v46  ;;  %p799_p3 = pnand %p798_p2, %p794_p13 }
  0x1e   : > { %670 = vmatpush.xpose.msk.msra.mxu1 %vm238_vm0, %v236_v7  ;;  %v228_v39 = vmul.f32 %v195_v37, %v195_v37  ;;  %v227_v45 = vmul.f32 %v194_v42, %v194_v42  ;;  %v226_v49 = vmul.f32 %v193_v47, %v193_v47  ;;  %v176_v50 = vld [vmem:[%s913_s28 + $0x18] sm:$0xff]  ;;  %v175_v54 = vld [vmem:[%s913_s28 + $0x10] sm:$0xff]  ;;  %v174_v58 = vld [vmem:[%s913_s28 + $0x8] sm:$0xff] }
  0x1f   : > { %688 = vmatpush.xpose.msk.msra.mxu2 %vm238_vm0, %v186_v8  ;;  %v192_v51 = vld [vmem:[%s913_s28 + $0x98] sm:$0xff]  ;;  %v209_v52 = vmul.f32 %v176_v50, %v176_v50  ;;  %v191_v55 = vld [vmem:[%s913_s28 + $0x90] sm:$0xff]  ;;  %v208_v56 = vmul.f32 %v175_v54, %v175_v54  ;;  %v190_v59 = vld [vmem:[%s913_s28 + $0x88] sm:$0xff]  ;;  %v207_v60 = vmul.f32 %v174_v58, %v174_v58 }
  0x20   : > { %705 = vmatpush.xpose.msk.msra.mxu3 %vm238_vm0, %v202_v9  ;;  %v225_v53 = vmul.f32 %v192_v51, %v192_v51  ;;  %v224_v57 = vmul.f32 %v191_v55, %v191_v55  ;;  %v223_v61 = vmul.f32 %v190_v59, %v190_v59  ;;  %v173_v62 = vld [vmem:[%s913_s28] sm:$0xff] }
  0x21   : > { %654 = vmatpush.xpose.msk.msra.mxu0 %vm238_vm0, %v219_v10  ;;  %v189_v63 = vld [vmem:[%s913_s28 + $0x80] sm:$0xff]  ;;  %v206_v0 = vmul.f32 %v173_v62, %v173_v62 }
  0x22   : > { %671 = vmatpush.xpose.msk.msra.mxu1 %vm238_vm0, %v235_v11  ;;  %v222_v1 = vmul.f32 %v189_v63, %v189_v63  ;;  %v172_v2 = vld [vmem:[%s1055_s1] sm:$0xff] }
  0x23   : > { %689 = vmatpush.xpose.msk.msra.mxu2 %vm238_vm0, %v185_v12 }
  0x24   : > { %706 = vmatpush.xpose.msk.msra.mxu3 %vm238_vm0, %v201_v13 }
  0x25   : > { %655 = vmatpush.xpose.msk.msra.mxu0 %vm238_vm0, %v218_v14 }
  0x26   : > { %672 = vmatpush.xpose.msk.msra.mxu1 %vm238_vm0, %v234_v15 }
  0x27   : > { %690 = vmatpush.xpose.msk.msra.mxu2 %vm238_vm0, %v184_v16  ;;  %v544_v16 = vlaneseq }
  0x28   : > { %707 = vmatpush.xpose.msk.msra.mxu3 %vm238_vm0, %v200_v17 }
  0x29   : > { %656 = vmatpush.xpose.msk.msra.mxu0 %vm238_vm0, %v217_v18 }
  0x2a   : > { %673 = vmatpush.xpose.msk.msra.mxu1 %vm238_vm0, %v233_v19 }
  0x2b   : > { %691 = vmatpush.xpose.msk.msra.mxu2 %vm238_vm0, %v183_v20 }
  0x2c   : > { %708 = vmatpush.xpose.msk.msra.mxu3 %vm238_vm0, %v199_v21  ;;  %v545_v21 = vand.u32 127, %v544_v16 }
  0x2d   : > { %657 = vmatpush.xpose.msk.msra.mxu0 %vm238_vm0, %v216_v22 }
  0x2e   : > { %674 = vmatpush.xpose.msk.msra.mxu1 %vm238_vm0, %v232_v23 }
  0x2f   : > { %692 = vmatpush.xpose.msk.msra.mxu2 %vm238_vm0, %v182_v24 }
  0x30   : > { %709 = vmatpush.xpose.msk.msra.mxu3 %vm238_vm0, %v198_v25 }
  0x31   : > { %658 = vmatpush.xpose.msk.msra.mxu0 %vm238_vm0, %v215_v26 }
  0x32   : > { %675 = vmatpush.xpose.msk.msra.mxu1 %vm238_vm0, %v231_v27 }
  0x33   : > { %693 = vmatpush.xpose.msk.msra.mxu2 %vm238_vm0, %v181_v28 }
  0x34   : > { %710 = vmatpush.xpose.msk.msra.mxu3 %vm238_vm0, %v197_v29  ;;  %v546_v29 = vadd.s32 128, %v545_v21 }
  0x35   : > { %659 = vmatpush.xpose.msk.msra.mxu0 %vm238_vm0, %v214_v30  ;;  %v547_v30 = vstv %s720_s6 }
  0x36   : > { %676 = vmatpush.xpose.msk.msra.mxu1 %vm238_vm0, %v230_v31 }
  0x37   : > { %694 = vmatpush.xpose.msk.msra.mxu2 %vm238_vm0, %v180_v32 }
  0x38   : > { %711 = vmatpush.xpose.msk.msra.mxu3 %vm238_vm0, %v196_v33 }
  0x39   : > { %660 = vmatpush.xpose.msk.msra.mxu0 %vm238_vm0, %v213_v34  ;;  %v548_v34 = vadd.s32 %v547_v30, %v545_v21 }
  0x3a   : > { %677 = vmatpush.xpose.msk.msra.mxu1 %vm238_vm0, %v229_v35 }
  0x3b   : > { %695 = vmatpush.xpose.msk.msra.mxu2 %vm238_vm0, %v179_v36  ;;  %v549_v36 = vadd.s32 %v547_v30, %v546_v29 }
  0x3c   : > { %712 = vmatpush.xpose.msk.msra.mxu3 %vm238_vm0, %v195_v37 }
  0x3d   : > { %661 = vmatpush.xpose.msk.msra.mxu0 %vm238_vm0, %v212_v38 }
  0x3e   : > { %678 = vmatpush.xpose.msk.msra.mxu1 %vm238_vm0, %v228_v39 }
  0x3f   : > { %696 = vmatpush.xpose.msk.msra.mxu2 %vm238_vm0, %v178_v41 }
  0x40   : > { %713 = vmatpush.xpose.msk.msra.mxu3 %vm238_vm0, %v194_v42 }
  0x41   : > { %662 = vmatpush.xpose.msk.msra.mxu0 %vm238_vm0, %v211_v44 }
  0x42   : > { %679 = vmatpush.xpose.msk.msra.mxu1 %vm238_vm0, %v227_v45 }
  0x43   : > { %697 = vmatpush.xpose.msk.msra.mxu2 %vm238_vm0, %v177_v46 }
  0x44   : > { %714 = vmatpush.xpose.msk.msra.mxu3 %vm238_vm0, %v193_v47 }
  0x45   : > { %663 = vmatpush.xpose.msk.msra.mxu0 %vm238_vm0, %v210_v48 }
  0x46   : > { %680 = vmatpush.xpose.msk.msra.mxu1 %vm238_vm0, %v226_v49 }
  0x47   : > { %698 = vmatpush.xpose.msk.msra.mxu2 %vm238_vm0, %v176_v50 }
  0x48   : > { %715 = vmatpush.xpose.msk.msra.mxu3 %vm238_vm0, %v192_v51 }
  0x49   : > { %664 = vmatpush.xpose.msk.msra.mxu0 %vm238_vm0, %v209_v52 }
  0x4a   : > { %681 = vmatpush.xpose.msk.msra.mxu1 %vm238_vm0, %v225_v53 }
  0x4b   : > { %699 = vmatpush.xpose.msk.msra.mxu2 %vm238_vm0, %v175_v54 }
  0x4c   : > { %716 = vmatpush.xpose.msk.msra.mxu3 %vm238_vm0, %v191_v55 }
  0x4d   : > { %665 = vmatpush.xpose.msk.msra.mxu0 %vm238_vm0, %v208_v56 }
  0x4e   : > { %682 = vmatpush.xpose.msk.msra.mxu1 %vm238_vm0, %v224_v57 }
  0x4f   : > { %700 = vmatpush.xpose.msk.msra.mxu2 %vm238_vm0, %v174_v58 }
  0x50   : > { %717 = vmatpush.xpose.msk.msra.mxu3 %vm238_vm0, %v190_v59 }
  0x51   : > { %666 = vmatpush.xpose.msk.msra.mxu0 %vm238_vm0, %v207_v60 }
  0x52   : > { %683 = vmatpush.xpose.msk.msra.mxu1 %vm238_vm0, %v223_v61 }
  0x53   : > { %701 = vmatpush.xpose.msk.msra.mxu2 %vm238_vm0, %v173_v62 }
  0x54   : > { %718 = vmatpush.xpose.msk.msra.mxu3 %vm238_vm0, %v189_v63 }
  0x55   : > { %667 = vmatpush.xpose.msk.msra.mxu0 %vm238_vm0, %v206_v0 }
  0x56   : > { %684 = vmatpush.xpose.msk.msra.mxu1 %vm238_vm0, %v222_v1  ;;  %702 = vmatmul.msk.f32.vlgmr.msra.gmra.mxu2 %vm238_vm0, %v172_v2 }
  0x57   : > { %719 = vmatmul.msk.f32.vlgmr.msra.gmra.mxu3 %vm238_vm0, %v172_v2 }
  0x58   : > { %668 = vmatmul.msk.f32.vlgmr.msra.gmra.mxu0 %vm238_vm0, %v840_v3 }
  0x59   : > { %685 = vmatmul.msk.f32.vlgmr.msra.gmra.mxu1 %vm238_vm0, %v840_v3 }
  0x87   : > { %v552_v37 = vpop.permute.xlu0 %551 }
  0x88   : > { %vm553_vm7 = vcmp.eq.s32.totalorder %v548_v34, %v552_v37  ;;  %vm554_vm8 = vcmp.eq.s32.totalorder %v549_v36, %v552_v37 }
  0xd5   : > { %v355_v4 = vpop.f32.mrf.mxu0 }
  0xd6   : > { %v375_v5 = vpop.f32.mrf.mxu1  ;;  %v378_v6 = vmax.f32 %v355_v4, 1e-24 }
  0xd7   : > { %v379_v7 = vmax.f32 %v375_v5, 1e-24 }
  0xd8   : > { %771 = vrsqrt.f32 %v378_v6  ;;  %vm386_vm3 = vweird.f32 %v378_v6 }
  0xd9   : > { %773 = vrsqrt.f32 %v379_v7  ;;  %vm396_vm4 = vweird.f32 %v379_v7  ;;  %v516_v23 = vpop.f32.mrf.mxu2 }
  0xda   : > { %v536_v26 = vpop.f32.mrf.mxu3 }
  0xde   : > { %v772_v8 = vpop.eup %771 }
  0xdf   : > { %v774_v9 = vpop.eup %773  ;;  %v381_v10 = vmul.f32 %v772_v8, %v378_v6  ;;  %vm387_vm1 = vweird.f32 %v772_v8 }
  0xe0   : > { %v391_v11 = vmul.f32 %v774_v9, %v379_v7  ;;  %vm397_vm2 = vweird.f32 %v774_v9  ;;  %vm388_vm5 = vmor %vm386_vm3, %vm387_vm1 }
  0xe1   : > { %v382_v12 = vmul.f32 %v772_v8, %v381_v10  ;;  %vm398_vm6 = vmor %vm396_vm4, %vm397_vm2 }
  0xe2   : > { %v392_v13 = vmul.f32 %v774_v9, %v391_v11 }
  0xe3   : > { %v383_v14 = vmul.f32 0.5, %v382_v12 }
  0xe4   : > { %v393_v15 = vmul.f32 0.5, %v392_v13 }
  0xe5   : > { %v384_v17 = vsub.f32 1.5, %v383_v14 }
  0xe6   : > { %v394_v18 = vsub.f32 1.5, %v393_v15 }
  0xe7   : > { %v385_v19 = vmul.f32 %v772_v8, %v384_v17 }
  0xe8   : > { %v395_v20 = vmul.f32 %v774_v9, %v394_v18 }
  0xe9   : > { %v389_v22 = vsel %vm388_vm5, %v772_v8, %v385_v19 }
  0xea   : > { %v539_v24 = vperm.slane %v389_v22, 0  ;;  %v399_v25 = vsel %vm398_vm6, %v774_v9, %v395_v20 }
  0xeb   : > { %v540_v27 = vperm.slane %v399_v25, 0 }
  0xec   : > { %v541_v28 = vmul.f32 %v539_v24, %v516_v23 }
  0xed   : > { %v542_v31 = vmul.f32 %v540_v27, %v536_v26 }
  0xee   : > { %v555_v32 = vmul.f32 0.64421767, %v541_v28 }
  0xef   : > { %v556_v33 = vmul.f32 0.64421767, %v542_v31 }
  0xf0   : > { %v557_v35 = vadd.f32 0.7648422, %v555_v32 }
  0xf1   : > { %v558_v38 = vadd.f32 0.7648422, %v556_v33 }
  0xf2   : > { %v559_v39 = vmul.f32 %v557_v35, %v541_v28 }
  0xf3   : > { %v560_v40 = vmul.f32 %v558_v38, %v542_v31 }
  0xf4   : > { %v721_v41 = vadd.f32 -0.64421767, %v559_v39 }
  0xf5   : > { %v722_v42 = vadd.f32 -0.64421767, %v560_v40 }
  0xf6   : > { %v563_v43 = vsel %vm553_vm7, %v721_v41, %v541_v28 }
  0xf7   : > { %v564_v44 = vsel %vm554_vm8, %v722_v42, %v542_v31  ;;  %v565_v45 = vmul.f32 40.0, %v563_v43 }
  0xf8   : > { %v566_v46 = vmul.f32 40.0, %v564_v44 }
  0xf9   : > { %567 = vst [vmem:[%s164_s19] sm:$0xff] %v565_v45 }
  0xfa   : > { %568 = vst [vmem:[%s164_s19 + $0x8] sm:$0xff] %v566_v46 }
  0xfb   : > { %802 = shalt.err (!%p799_p3)
}
  0xfc   : > { %729 = dma.vmem_to_hbm [thread:$0]  (%p899_p5), %s584_s20, 256, %s586_s24, %s570_s16  }
  0xfd PF: > { %p735_p4 = scmp.ge.s32.totalorder %s837_s15, 2  ;;  %s597_s5 = sand.u32 1, %s825_s12  }
  0xfe   : > { %s598_s6 = scalar_lea.sflag [#allocation3], %s597_s5 }
  0xff   : > { %p732_p7 = pnand %p735_p4, %p903_p6 }
 0x101   : > { %p733_p8 = pneg %p732_p7 }
 0x103   : > { %820 = dma.done.wait (%p733_p8), %s598_s6, 256  }
 0x104   : > { %822 = vsyncadd (%p733_p8), %s598_s6, 4294967040  ;;  %p13_p9 = scmp.ge.s32.totalorder %s886_s18, 6   ;;  %s1060_s12 = smov %s829_s13 }
 0x105   : > { %s1061_s13 = smov %s833_s14  ;;  %s1062_s14 = smov %s897_s21 }
 0x106   : > { %s1063_s15 = smov %s886_s18  ;;  %15 = sbr.rel (!%p13_p9) target bundleno = 3 (0x3), region = 67 }
 0x10b   :  { %604 = vsyncpa [#allocation3], 1 }
 0x10c   :  { %606 = vsyncpa [#allocation3 + $0x1], 1 }

</bundles_post_ra>
